<compile_context>
chip_gen: v7x
topology: tpu7x:2x2x1
jax: 0.10.0
libtpu: 0.0.40
codegen_flags: <defaults>
</compile_context>

<pallas_src>
import functools

import numpy as np
import jax
import jax.numpy as jnp
from jax.experimental import pallas as pl
from jax.experimental.pallas import tpu as pltpu

IMG = 128           # stands in for the hard-coded 512 in the torch model
HR = IMG // 4       # stands in for the hard-coded 128
SENT_T = 16         # sentinel time steps: 16 -> 8 -> 4 -> 2 -> 1
SENT_HW = IMG // 16 + 8   # sentinel spatial size so it ends at IMG/16 after conv5-7


def _round_up(x, m):
    return (x + m - 1) // m * m


def _divisor_tile(padded, cap):
    """Largest tile <= cap that divides `padded` (padded is a multiple of 128)."""
    if padded <= cap:
        return padded
    for c in (1024, 512, 256, 128):
        if c <= cap and padded % c == 0:
            return c
    return 128


# ----------------------------------------------------------------------------
# Pallas kernels
# ----------------------------------------------------------------------------
def _mm_kernel(*refs, nsteps, act, slope, has_res):
    if has_res:
        a_ref, b_ref, bias_ref, res_ref, o_ref, acc_ref = refs
    else:
        a_ref, b_ref, bias_ref, o_ref, acc_ref = refs
        res_ref = None
    k = pl.program_id(3)

    @pl.when(k == 0)
    def _():
        acc_ref[...] = jnp.zeros_like(acc_ref)

    acc_ref[...] += jnp.dot(a_ref[0], b_ref[0], preferred_element_type=jnp.float32)

    @pl.when(k == nsteps - 1)
    def _():
        r = acc_ref[...] + bias_ref[0].astype(jnp.float32)
        if has_res:
            r = r + res_ref[0].astype(jnp.float32)
        if act == "lrelu":
            r = jnp.where(r > 0, r, slope * r)
        elif act == "relu":
            r = jnp.maximum(r, 0.0)
        elif act == "sigmoid":
            r = 1.0 / (1.0 + jnp.exp(-r))
        o_ref[0] = r.astype(o_ref.dtype)


@functools.partial(jax.jit, static_argnames=("act", "slope", "out_dtype"))
def batched_matmul_bias_act(a, b, bias, res=None, *, act="none", slope=0.1,
                            out_dtype=jnp.bfloat16):
    """a: (G, M, K), b: (G, K, N), bias: (G, N) -> (G, M, N).

    MXU runs on bf16 copies of a/b, accumulation is f32; optional `res`
    (G, M, N) is added in the epilogue before the activation.
    """
    G, M, K = a.shape
    _, _, N = b.shape
    Mp0 = _round_up(M, 16)                      # bf16 sublane packing wants 16
    if Mp0 <= 256:
        tm, Mp = Mp0, Mp0
    else:
        tm, Mp = 256, _round_up(M, 256)
    Kp = _round_up(K, 128)
    tk = _divisor_tile(Kp, 1024)
    Np = _round_up(N, 128)
    tn = _divisor_tile(Np, 256)

    a_p = jnp.pad(a.astype(jnp.bfloat16), ((0, 0), (0, Mp - M), (0, Kp - K)))
    b_p = jnp.pad(b.astype(jnp.bfloat16), ((0, 0), (0, Kp - K), (0, Np - N)))
    bias_p = jnp.pad(bias.astype(jnp.float32), ((0, 0), (0, Np - N))).reshape(G, 1, Np)

    nsteps = Kp // tk
    grid = (G, Mp // tm, Np // tn, nsteps)
    inputs = [a_p, b_p, bias_p]
    in_specs = [
        pl.BlockSpec((1, tm, tk), lambda g, i, j, k: (g, i, k)),
        pl.BlockSpec((1, tk, tn), lambda g, i, j, k: (g, k, j)),
        pl.BlockSpec((1, 1, tn), lambda g, i, j, k: (g, 0, j)),
    ]
    has_res = res is not None
    if has_res:
        inputs.append(jnp.pad(res, ((0, 0), (0, Mp - M), (0, Np - N))))
        in_specs.append(pl.BlockSpec((1, tm, tn), lambda g, i, j, k: (g, i, j)))

    out = pl.pallas_call(
        functools.partial(_mm_kernel, nsteps=nsteps, act=act, slope=slope,
                          has_res=has_res),
        out_shape=jax.ShapeDtypeStruct((G, Mp, Np), out_dtype),
        grid_spec=pltpu.PrefetchScalarGridSpec(
            num_scalar_prefetch=0,
            grid=grid,
            in_specs=in_specs,
            out_specs=pl.BlockSpec((1, tm, tn), lambda g, i, j, k: (g, i, j)),
            scratch_shapes=[pltpu.VMEM((tm, tn), jnp.float32)]),
        compiler_params=pltpu.CompilerParams(
            dimension_semantics=("parallel", "parallel", "parallel", "arbitrary")),
    )(*inputs)
    return out[:, :M, :N]


def _se_kernel(f_ref, w1_ref, b1_ref, w2_ref, b2_ref, o_ref):
    """Fused Squeeze-Excitation: pool + fc1 + relu + fc2 + sigmoid + scale."""
    f = f_ref[0].astype(jnp.float32)                              # (M, Cp)
    pooled = jnp.mean(f, axis=0, keepdims=True)                   # (1, Cp)
    pooled = jnp.broadcast_to(pooled, (16, f.shape[1]))           # MXU-friendly rows
    h = jnp.dot(pooled.astype(jnp.bfloat16), w1_ref[...],
                preferred_element_type=jnp.float32) + b1_ref[...].astype(jnp.float32)
    h = jnp.maximum(h, 0.0)                                       # (16, Sp)
    g = jnp.dot(h.astype(jnp.bfloat16), w2_ref[...],
                preferred_element_type=jnp.float32) + b2_ref[...].astype(jnp.float32)
    gate = 1.0 / (1.0 + jnp.exp(-g[0:1, :]))                      # (1, Cp)
    o_ref[0] = (f * gate).astype(o_ref.dtype)


@jax.jit
def se_block(f, w1, b1, w2, b2):
    """f: (B, HW, C) bf16 -> f * sigmoid(W2 relu(W1 mean_HW(f) + b1) + b2).

    Whole SE path in one Pallas call per batch element; weights are cast to
    bf16 for the MXU, gating math stays in f32.
    """
    B, M, C = f.shape
    S = w1.shape[1]                       # w1: (C, S), w2: (S, C)
    Cp = _round_up(C, 128)
    Sp = _round_up(S, 128)
    fp = jnp.pad(f, ((0, 0), (0, 0), (0, Cp - C)))
    w1p = jnp.pad(w1.astype(jnp.bfloat16), ((0, Cp - C), (0, Sp - S)))
    b1p = jnp.pad(b1.astype(jnp.float32), (0, Sp - S)).reshape(1, Sp)
    w2p = jnp.pad(w2.astype(jnp.bfloat16), ((0, Sp - S), (0, Cp - C)))
    b2p = jnp.pad(b2.astype(jnp.float32), (0, Cp - C)).reshape(1, Cp)
    out = pl.pallas_call(
        _se_kernel,
        out_shape=jax.ShapeDtypeStruct((B, M, Cp), f.dtype),
        grid=(B,),
        in_specs=[pl.BlockSpec((1, M, Cp), lambda b: (b, 0, 0)),
                  pl.BlockSpec((Cp, Sp), lambda b: (0, 0)),
                  pl.BlockSpec((1, Sp), lambda b: (0, 0)),
                  pl.BlockSpec((Sp, Cp), lambda b: (0, 0)),
                  pl.BlockSpec((1, Cp), lambda b: (0, 0))],
        out_specs=pl.BlockSpec((1, M, Cp), lambda b: (b, 0, 0)),
        compiler_params=pltpu.CompilerParams(
            dimension_semantics=("parallel",)),
    )(fp, w1p, b1p, w2p, b2p)
    return out[:, :, :C]


def _lerp_kernel(a_ref, b_ref, w_ref, *rest, has_add, add_scale):
    if has_add:
        add_ref, o_ref = rest
    else:
        (o_ref,) = rest
    w = w_ref[...].astype(jnp.float32)
    r = a_ref[...].astype(jnp.float32) * (1.0 - w) + b_ref[...].astype(jnp.float32) * w
    if has_add:
        r = r + add_scale * add_ref[...].astype(jnp.float32)
    o_ref[...] = r.astype(o_ref.dtype)


@functools.partial(jax.jit, static_argnames=("weight_axis", "out_dtype", "add_scale"))
def lerp2d(a, b, w, add=None, *, weight_axis, out_dtype, add_scale=1.0):
    """out = (1-w)*a + w*b (+ add_scale*add).  a, b: (R, N); w broadcasts along
    rows (weight_axis=0, shape (R,1)) or columns (weight_axis=1, shape (1,N))."""
    R, N = a.shape
    Rp, tr = _round_up(R, 128), 128
    Np = _round_up(N, 128)
    tc = _divisor_tile(Np, 1024)
    a_p = jnp.pad(a, ((0, Rp - R), (0, Np - N)))
    b_p = jnp.pad(b, ((0, Rp - R), (0, Np - N)))
    if weight_axis == 0:
        w_p = jnp.pad(w.astype(jnp.float32), ((0, Rp - R), (0, 0)))
        w_spec = pl.BlockSpec((tr, 1), lambda i, j: (i, 0))
    else:
        w_p = jnp.pad(w.astype(jnp.float32), ((0, 0), (0, Np - N)))
        w_spec = pl.BlockSpec((1, tc), lambda i, j: (0, j))
    inputs = [a_p, b_p, w_p]
    in_specs = [pl.BlockSpec((tr, tc), lambda i, j: (i, j)),
                pl.BlockSpec((tr, tc), lambda i, j: (i, j)),
                w_spec]
    has_add = add is not None
    if has_add:
        inputs.append(jnp.pad(add, ((0, Rp - R), (0, Np - N))))
        in_specs.append(pl.BlockSpec((tr, tc), lambda i, j: (i, j)))
    out = pl.pallas_call(
        functools.partial(_lerp_kernel, has_add=has_add, add_scale=add_scale),
        out_shape=jax.ShapeDtypeStruct((Rp, Np), out_dtype),
        grid=(Rp // tr, Np // tc),
        in_specs=in_specs,
        out_specs=pl.BlockSpec((tr, tc), lambda i, j: (i, j)),
        compiler_params=pltpu.CompilerParams(
            dimension_semantics=("parallel", "parallel")),
    )(*inputs)
    return out[:R, :N]


# ----------------------------------------------------------------------------
# Conv wrappers (slicing glue + Pallas matmul)
# ----------------------------------------------------------------------------
def conv2d(x, w, b, stride=1, padding=0, groups=1, act="none",
           res=None, out_dtype=jnp.bfloat16):
    """x: (B, H, W, Cin) channels-last; w: (Cout, Cin//groups, kh, kw) torch layout.
    `res` (B, Ho, Wo, Cout) is fused into the epilogue before the activation."""
    B, H, W, Cin = x.shape
    Cout, Cg, kh, kw = w.shape
    if padding:
        x = jnp.pad(x, ((0, 0), (padding, padding), (padding, padding), (0, 0)))
    Hp, Wp = x.shape[1], x.shape[2]
    Ho = (Hp - kh) // stride + 1
    Wo = (Wp - kw) // stride + 1

    if groups == 1:
        if kh == 1 and kw == 1 and stride == 1:
            p = x.reshape(1, B * Ho * Wo, Cin)
        else:
            taps = [x[:, i:i + stride * Ho:stride, j:j + stride * Wo:stride, :]
                    for i in range(kh) for j in range(kw)]
            p = jnp.concatenate(taps, axis=-1).reshape(1, B * Ho * Wo, kh * kw * Cin)
        wt = jnp.transpose(w, (2, 3, 1, 0)).reshape(1, kh * kw * Cin, Cout)
        resf = None if res is None else res.reshape(1, B * Ho * Wo, Cout)
        out = batched_matmul_bias_act(p, wt, b.reshape(1, Cout), res=resf,
                                      act=act, out_dtype=out_dtype)
        return out.reshape(B, Ho, Wo, Cout)

    assert res is None, "residual fusion only supported for groups == 1"
    taps = [x[:, i:i + stride * Ho:stride, j:j + stride * Wo:stride, :]
            for i in range(kh) for j in range(kw)]
    T = kh * kw
    G = groups
    Cog = Cout // G
    p = jnp.stack(taps, axis=3)                                # (B, Ho, Wo, T, Cin)
    p = p.reshape(B, Ho, Wo, T, G, Cg)
    p = jnp.transpose(p, (4, 0, 1, 2, 3, 5)).reshape(G, B * Ho * Wo, T * Cg)
    wt = jnp.transpose(w, (2, 3, 1, 0)).reshape(T, Cg, G, Cog)
    wt = jnp.transpose(wt, (2, 0, 1, 3)).reshape(G, T * Cg, Cog)
    out = batched_matmul_bias_act(p, wt, b.reshape(G, Cog), act=act,
                                  out_dtype=out_dtype)
    out = out.reshape(G, B, Ho, Wo, Cog)
    return jnp.transpose(out, (1, 2, 3, 0, 4)).reshape(B, Ho, Wo, Cout)


def conv1x1_segments(parts, w, b, act="none", out_dtype=jnp.bfloat16):
    """1x1 conv over the channel-concat of `parts`, without materializing the
    concatenation: the weight is split along Cin and the per-segment matmuls
    are chained through the fused `res` operand (partials kept in f32)."""
    B, H, W, _ = parts[0].shape
    Cout = w.shape[0]
    M = B * H * W
    zero_b = jnp.zeros((Cout,), jnp.float32)
    res = None
    off = 0
    for idx, t in enumerate(parts):
        C = t.shape[-1]
        wseg = jnp.transpose(w[:, off:off + C, 0, 0])          # (C, Cout)
        off += C
        last = idx == len(parts) - 1
        res = batched_matmul_bias_act(
            t.reshape(1, M, C), wseg[None],
            (b if idx == 0 else zero_b).reshape(1, Cout),
            res=res,
            act=act if last else "none",
            out_dtype=out_dtype if last else jnp.float32)
    return res.reshape(B, H, W, Cout)


def conv3d(x, w, b, stride=(1, 1, 1), act="none", out_dtype=jnp.bfloat16):
    """x: (B, D, H, W, Cin) channels-last; w: (Cout, Cin, kd, kh, kw); no padding."""
    B, D, H, W, Cin = x.shape
    Cout, _, kd, kh, kw = w.shape
    sd, sh, sw = stride
    Do = (D - kd) // sd + 1
    Ho = (H - kh) // sh + 1
    Wo = (W - kw) // sw + 1
    taps = []
    for d in range(kd):
        for i in range(kh):
            for j in range(kw):
                taps.append(x[:, d:d + sd * Do:sd, i:i + sh * Ho:sh,
                              j:j + sw * Wo:sw, :])
    p = jnp.concatenate(taps, axis=-1).reshape(1, B * Do * Ho * Wo, kd * kh * kw * Cin)
    wt = jnp.transpose(w, (2, 3, 4, 1, 0)).reshape(1, kd * kh * kw * Cin, Cout)
    out = batched_matmul_bias_act(p, wt, b.reshape(1, Cout), act=act,
                                  out_dtype=out_dtype)
    return out.reshape(B, Do, Ho, Wo, Cout)


# ----------------------------------------------------------------------------
# Bilinear interpolation (torch align_corners=False) via separable lerp kernel
# ----------------------------------------------------------------------------
def _interp_1d(n_in, n_out):
    src = (np.arange(n_out) + 0.5) * (n_in / n_out) - 0.5
    src = np.clip(src, 0.0, n_in - 1)
    lo = np.floor(src).astype(np.int32)
    hi = np.minimum(lo + 1, n_in - 1).astype(np.int32)
    frac = (src - lo).astype(np.float32)
    return lo, hi, frac


def interpolate_bilinear(x, out_h, out_w, out_dtype=jnp.float32,
                         add=None, add_scale=1.0):
    """x: (B, H, W, C) -> (B, out_h, out_w, C); optionally fuses + add_scale*add."""
    B, H, W, C = x.shape
    lo_h, hi_h, fr_h = _interp_1d(H, out_h)
    lo_w, hi_w, fr_w = _interp_1d(W, out_w)
    # vertical pass: rows = B*out_h, cols = W*C, per-row weight
    x_lo = jnp.take(x, jnp.asarray(lo_h), axis=1).reshape(B * out_h, W * C)
    x_hi = jnp.take(x, jnp.asarray(hi_h), axis=1).reshape(B * out_h, W * C)
    wv = jnp.broadcast_to(jnp.asarray(fr_h)[None, :], (B, out_h)).reshape(B * out_h, 1)
    y = lerp2d(x_lo, x_hi, wv, weight_axis=0, out_dtype=jnp.float32)
    y = y.reshape(B, out_h, W, C)
    # horizontal pass: rows = B*out_h, cols = out_w*C, per-column weight
    y_lo = jnp.take(y, jnp.asarray(lo_w), axis=2).reshape(B * out_h, out_w * C)
    y_hi = jnp.take(y, jnp.asarray(hi_w), axis=2).reshape(B * out_h, out_w * C)
    wh = jnp.repeat(jnp.asarray(fr_w), C).reshape(1, out_w * C)
    addf = None if add is None else add.reshape(B * out_h, out_w * C)
    out = lerp2d(y_lo, y_hi, wh, addf, weight_axis=1, out_dtype=out_dtype,
                 add_scale=add_scale)
    return out.reshape(B, out_h, out_w, C)


# ----------------------------------------------------------------------------
# Deterministic parameter construction
# ----------------------------------------------------------------------------
class ParamGen:
    def __init__(self, seed=0):
        self._key = jax.random.PRNGKey(seed)

    def take(self, shape, scale):
        self._key, sub = jax.random.split(self._key)
        return scale * jax.random.normal(sub, shape, dtype=jnp.float32)


def make_conv(pg, shape):
    cout = shape[0]
    fan_in = int(np.prod(shape[1:]))
    return {"w": pg.take(shape, 1.0 / np.sqrt(fan_in)),
            "b": pg.take((cout,), 0.01)}


def make_conv_bn(pg, cin, cout, k, groups=1, conv_bias=False):
    """Conv (bias optional) + eval-mode BatchNorm folded into (w, b)."""
    cg = cin // groups
    fan_in = cg * k * k
    w = pg.take((cout, cg, k, k), 1.0 / np.sqrt(fan_in))
    cb = pg.take((cout,), 0.01) if conv_bias else jnp.zeros((cout,), jnp.float32)
    gamma = 1.0 + pg.take((cout,), 0.05)
    beta = pg.take((cout,), 0.05)
    mean = pg.take((cout,), 0.05)
    var = 1.0 + jnp.abs(pg.take((cout,), 0.05))
    scale = gamma / jnp.sqrt(var + 1e-5)
    return {"w": w * scale[:, None, None, None], "b": (cb - mean) * scale + beta}


def build_regnet_params(pg):
    """RegNet-Y 16GF stem + trunk_output.block1..block3 (block4 & fc deleted)."""
    widths = [224, 448, 1232]
    depths = [2, 4, 11]
    group_w = 112
    reg = {"stem": make_conv_bn(pg, 6, 32, 3, conv_bias=True)}
    stages = []
    w_in = 32
    for w_out, d in zip(widths, depths):
        blocks = []
        for bi in range(d):
            stride = 2 if bi == 0 else 1
            blk = {"stride": stride, "groups": w_out // group_w}
            if w_in != w_out or stride != 1:
                blk["proj"] = make_conv_bn(pg, w_in, w_out, 1)
            blk["a"] = make_conv_bn(pg, w_in, w_out, 1)
            blk["g3"] = make_conv_bn(pg, w_out, w_out, 3, groups=w_out // group_w)
            sq = int(round(0.25 * w_in))
            blk["se1"] = {"w": pg.take((sq, w_out, 1, 1), 1.0 / np.sqrt(w_out)),
                          "b": pg.take((sq,), 0.01)}
            blk["se2"] = {"w": pg.take((w_out, sq, 1, 1), 1.0 / np.sqrt(sq)),
                          "b": pg.take((w_out,), 0.01)}
            blk["c"] = make_conv_bn(pg, w_out, w_out, 1)
            blocks.append(blk)
            w_in = w_out
        stages.append(blocks)
    reg["stages"] = stages
    return reg


def build_params():
    pg = ParamGen(0)
    P = {"reg": build_regnet_params(pg)}
    P["classiflow"] = make_conv(pg, (13, 1232, 1, 1))
    P["conv1"] = make_conv(pg, (32, 10, 2, 1, 1))
    P["conv2"] = make_conv(pg, (64, 32, 2, 1, 1))
    P["conv3"] = make_conv(pg, (92, 64, 3, 3, 3))
    P["conv4"] = make_conv(pg, (128, 92, 2, 1, 1))
    P["conv5"] = make_conv(pg, (256, 256, 3, 3))
    P["conv6"] = make_conv(pg, (256, 256, 3, 3))
    P["conv7"] = make_conv(pg, (280, 256, 3, 3))
    P["merge1"] = make_conv(pg, (512, 1512, 1, 1))
    P["merge2"] = make_conv(pg, (512, 2024, 1, 1))
    P["merge3"] = make_conv(pg, (112, 2024, 1, 1))
    P["decod1"] = make_conv(pg, (112, 336, 1, 1))
    P["decod2"] = make_conv(pg, (112, 448, 1, 1))
    P["decod3"] = make_conv(pg, (112, 448, 3, 3))
    P["decod4"] = make_conv(pg, (112, 448, 3, 3))
    P["classif"] = make_conv(pg, (13, 448, 1, 1))
    return P


# ----------------------------------------------------------------------------
# Model forward (mirrors MyNet3.forward)
# ----------------------------------------------------------------------------
def run_regnet_block(x, blk):
    stride = blk["stride"]
    f = conv2d(x, blk["a"]["w"], blk["a"]["b"], act="relu")
    f = conv2d(f, blk["g3"]["w"], blk["g3"]["b"], stride=stride, padding=1,
               groups=blk["groups"], act="relu")
    B, H, W, C = f.shape
    # Fused Squeeze-Excitation (pool + fc1 + relu + fc2 + sigmoid + scale)
    f = se_block(f.reshape(B, H * W, C),
                 jnp.transpose(blk["se1"]["w"][:, :, 0, 0]), blk["se1"]["b"],
                 jnp.transpose(blk["se2"]["w"][:, :, 0, 0]), blk["se2"]["b"])
    f = f.reshape(B, H, W, C)
    if "proj" in blk:
        sc = conv2d(x, blk["proj"]["w"], blk["proj"]["b"], stride=stride, act="none")
    else:
        sc = x
    # ReLU(shortcut + conv_c(f)) fused in the matmul epilogue
    return conv2d(f, blk["c"]["w"], blk["c"]["b"], act="relu", res=sc)


def forward_rgb(P, x_nchw):
    B = x_nchw.shape[0]
    xm = jnp.ones((B, 1, IMG, IMG), jnp.float32)
    x = (x_nchw.astype(jnp.float32) / 255.0 - 0.5) / 0.25
    x = jnp.concatenate([x, xm], axis=1)                        # (B, 6, IMG, IMG)
    x = jnp.transpose(x, (0, 2, 3, 1)).astype(jnp.bfloat16)     # channels-last bf16
    x = conv2d(x, P["reg"]["stem"]["w"], P["reg"]["stem"]["b"],
               stride=2, padding=1, act="relu")
    for blk in P["reg"]["stages"][0]:
        x = run_regnet_block(x, blk)
    hr = x                                                      # (B, IMG/4, IMG/4, 224)
    for blk in P["reg"]["stages"][1]:
        x = run_regnet_block(x, blk)
    for blk in P["reg"]["stages"][2]:
        x = run_regnet_block(x, blk)                            # (B, IMG/16, IMG/16, 1232)
    plow = conv2d(x, P["classiflow"]["w"], P["classiflow"]["b"],
                  act="none", out_dtype=jnp.float32)
    plow = interpolate_bilinear(plow, IMG, IMG, out_dtype=jnp.float32)
    return plow, x, hr


def forward_sentinel(P, s_ncdhw):
    s = jnp.transpose(s_ncdhw.astype(jnp.float32), (0, 2, 3, 4, 1)).astype(jnp.bfloat16)
    s = conv3d(s, P["conv1"]["w"], P["conv1"]["b"], stride=(2, 1, 1), act="lrelu")
    s = conv3d(s, P["conv2"]["w"], P["conv2"]["b"], stride=(2, 1, 1), act="lrelu")
    s = conv3d(s, P["conv3"]["w"], P["conv3"]["b"], stride=(1, 1, 1), act="lrelu")
    s = conv3d(s, P["conv4"]["w"], P["conv4"]["b"], stride=(2, 1, 1), act="lrelu")
    ss = jnp.mean(s.astype(jnp.float32), axis=1).astype(jnp.bfloat16)   # mean over depth
    sm = jnp.max(s, axis=1)                                             # max over depth
    s = jnp.concatenate([sm, ss], axis=-1)                    # torch.cat([max, mean], 1)
    s = conv2d(s, P["conv5"]["w"], P["conv5"]["b"], act="lrelu")
    s = conv2d(s, P["conv6"]["w"], P["conv6"]["b"], act="lrelu")
    s = conv2d(s, P["conv7"]["w"], P["conv7"]["b"], act="lrelu")
    return s


def forward_classifier(P, x, hr, s):
    # 1x1 convs over channel-concats computed as chained per-segment matmuls
    xs = conv1x1_segments([x, s], P["merge1"]["w"], P["merge1"]["b"], act="lrelu")
    xs = conv1x1_segments([x, s, xs], P["merge2"]["w"], P["merge2"]["b"], act="lrelu")
    xs = conv1x1_segments([x, s, xs], P["merge3"]["w"], P["merge3"]["b"], act="lrelu")
    f = interpolate_bilinear(xs, HR, HR, out_dtype=jnp.bfloat16)
    f2 = conv1x1_segments([f, hr], P["decod1"]["w"], P["decod1"]["b"], act="lrelu")
    f2 = conv1x1_segments([f, f2, hr], P["decod2"]["w"], P["decod2"]["b"], act="lrelu")
    f2 = conv2d(jnp.concatenate([f, f2, hr], axis=-1),
                P["decod3"]["w"], P["decod3"]["b"], padding=1, act="lrelu")
    f2 = conv2d(jnp.concatenate([f, f2, hr], axis=-1),
                P["decod4"]["w"], P["decod4"]["b"], padding=1, act="lrelu")
    p = conv1x1_segments([f, f2, hr], P["classif"]["w"], P["classif"]["b"],
                         act="none", out_dtype=jnp.float32)
    return p, xs


def forward(P, x, s):
    plow, xf, hr = forward_rgb(P, x)
    sf = forward_sentinel(P, s)
    p, _ = forward_classifier(P, xf, hr, sf)
    # final upsample with fused `+ 0.1 * plow`
    out = interpolate_bilinear(p, IMG, IMG, out_dtype=jnp.float32,
                               add=plow, add_scale=0.1)
    return jnp.transpose(out, (0, 3, 1, 2))                     # back to NCHW


# ----------------------------------------------------------------------------
if __name__ == "__main__":
    key = jax.random.PRNGKey(0)
    kx, ks = jax.random.split(key)
    # aerial image: 5 channels (RGB + NIR + elevation), values in [0, 255]
    x = jax.random.uniform(kx, (1, 5, IMG, IMG), jnp.float32, 0.0, 255.0)
    # sentinel time series: (B, 10 bands, T, H, W)
    s = jax.random.uniform(ks, (1, 10, SENT_T, SENT_HW, SENT_HW), jnp.float32, 0.0, 1.0)

    params = build_params()
    out = forward(params, x, s)
    out = jax.block_until_ready(out)

    assert out.shape == (1, 13, IMG, IMG), out.shape
    assert bool(jnp.all(jnp.isfinite(out)))
    print("KERNEL_OK")
</pallas_src>

<mosaic_0001>
module attributes {stable_mosaic.version = 11 : i64} {
  func.func @_mm_kernel(%arg0: i32, %arg1: i32, %arg2: i32, %arg3: i32, %arg4: memref<1x256x128xbf16, #tpu.memory_space<vmem>>, %arg5: memref<1x128x128xbf16, #tpu.memory_space<vmem>>, %arg6: memref<1x1x128xf32, #tpu.memory_space<vmem>>, %arg7: memref<1x256x128xbf16, #tpu.memory_space<vmem>>, %arg8: memref<256x128xf32, #tpu.memory_space<vmem>>) attributes {dimension_semantics = [#tpu.dimension_semantics<parallel>, #tpu.dimension_semantics<parallel>, #tpu.dimension_semantics<parallel>, #tpu.dimension_semantics<arbitrary>], iteration_bounds = array<i64: 1, 16, 1, 1>, scalar_prefetch = 0 : i64, scratch_operands = 1 : i64, tpu.core_type = #tpu.core_type<tc>, window_params = [{transform_indices = @transform_0, window_bounds = array<i64: 1, 256, 128>}, {transform_indices = @transform_1, window_bounds = array<i64: 1, 128, 128>}, {transform_indices = @transform_2, window_bounds = array<i64: 1, 1, 128>}, {transform_indices = @transform_3, window_bounds = array<i64: 1, 256, 128>}]} {
    %c0_i32 = arith.constant 0 : i32
    %0 = arith.cmpi eq, %arg3, %c0_i32 : i32
    %1 = arith.extui %0 : i1 to i32
    %c0_i32_0 = arith.constant 0 : i32
    %2 = arith.cmpi ne, %1, %c0_i32_0 : i32
    scf.if %2 {
      %cst_12 = arith.constant 0.000000e+00 : f32
      %14 = vector.broadcast %cst_12 : f32 to vector<256x128xf32>
      %c0_13 = arith.constant 0 : index
      %c0_14 = arith.constant 0 : index
      %15 = vector.load %arg8[%c0_13, %c0_14] : memref<256x128xf32, #tpu.memory_space<vmem>>, vector<256x128xf32>
      tpu.vector_store %arg8[%c0_13, %c0_14], %14 {strides = array<i32>} : memref<256x128xf32, #tpu.memory_space<vmem>>, vector<256x128xf32>,
    } else {
    }
    %c0 = arith.constant 0 : index
    %c0_1 = arith.constant 0 : index
    %3 = vector.load %arg8[%c0, %c0_1] : memref<256x128xf32, #tpu.memory_space<vmem>>, vector<256x128xf32>
    %c0_2 = arith.constant 0 : index
    %c0_3 = arith.constant 0 : index
    %c0_4 = arith.constant 0 : index
    %4 = vector.load %arg4[%c0_2, %c0_3, %c0_4] : memref<1x256x128xbf16, #tpu.memory_space<vmem>>, vector<1x256x128xbf16>
    %5 = vector.shape_cast %4 : vector<1x256x128xbf16> to vector<256x128xbf16>
    %c0_5 = arith.constant 0 : index
    %c0_6 = arith.constant 0 : index
    %c0_7 = arith.constant 0 : index
    %6 = vector.load %arg5[%c0_5, %c0_6, %c0_7] : memref<1x128x128xbf16, #tpu.memory_space<vmem>>, vector<1x128x128xbf16>
    %7 = vector.shape_cast %6 : vector<1x128x128xbf16> to vector<128x128xbf16>
    %cst = arith.constant dense<0.000000e+00> : vector<256x128xf32>
    %8 = tpu.matmul %5, %7, %cst {dimension_numbers = #tpu.dot_dimension_numbers<[1], [0], [0], [1], [0, 0, 1, 1], [], []>} : vector<256x128xbf16>, vector<128x128xbf16>, vector<256x128xf32> -> vector<256x128xf32>
    %9 = arith.addf %3, %8 : vector<256x128xf32>
    %c0_8 = arith.constant 0 : index
    %c0_9 = arith.constant 0 : index
    %10 = vector.load %arg8[%c0_8, %c0_9] : memref<256x128xf32, #tpu.memory_space<vmem>>, vector<256x128xf32>
    tpu.vector_store %arg8[%c0_8, %c0_9], %9 {strides = array<i32>} : memref<256x128xf32, #tpu.memory_space<vmem>>, vector<256x128xf32>,
    %c0_i32_10 = arith.constant 0 : i32
    %11 = arith.cmpi eq, %arg3, %c0_i32_10 : i32
    %12 = arith.extui %11 : i1 to i32
    %c0_i32_11 = arith.constant 0 : i32
    %13 = arith.cmpi ne, %12, %c0_i32_11 : i32
    scf.if %13 {
      %c0_12 = arith.constant 0 : index
      %c0_13 = arith.constant 0 : index
      %14 = vector.load %arg8[%c0_12, %c0_13] : memref<256x128xf32, #tpu.memory_space<vmem>>, vector<256x128xf32>
      %c0_14 = arith.constant 0 : index
      %c0_15 = arith.constant 0 : index
      %c0_16 = arith.constant 0 : index
      %15 = vector.load %arg6[%c0_14, %c0_15, %c0_16] : memref<1x1x128xf32, #tpu.memory_space<vmem>>, vector<1x1x128xf32>
      %16 = vector.shape_cast %15 : vector<1x1x128xf32> to vector<1x128xf32>
      %17 = vector.broadcast %16 : vector<1x128xf32> to vector<256x128xf32>
      %18 = arith.addf %14, %17 : vector<256x128xf32>
      %cst_17 = arith.constant 0.000000e+00 : f32
      %19 = vector.broadcast %cst_17 : f32 to vector<256x128xf32>
      %20 = arith.maximumf %18, %19 : vector<256x128xf32>
      %21 = arith.truncf %20 : vector<256x128xf32> to vector<256x128xbf16>
      %c0_18 = arith.constant 0 : index
      %c0_19 = arith.constant 0 : index
      %c0_20 = arith.constant 0 : index
      %22 = vector.load %arg7[%c0_18, %c0_19, %c0_20] : memref<1x256x128xbf16, #tpu.memory_space<vmem>>, vector<1x256x128xbf16>
      %23 = vector.shape_cast %22 : vector<1x256x128xbf16> to vector<256x128xbf16>
      %24 = vector.shape_cast %21 : vector<256x128xbf16> to vector<1x256x128xbf16>
      tpu.vector_store %arg7[%c0_18, %c0_19, %c0_20], %24 {strides = array<i32>} : memref<1x256x128xbf16, #tpu.memory_space<vmem>>, vector<1x256x128xbf16>,
    } else {
    }
    return
  }
  func.func @transform_0(%arg0: i32, %arg1: i32, %arg2: i32, %arg3: i32) -> (i32, i32, i32) {
    %c0_i32 = arith.constant 0 : i32
    return %arg0, %arg1, %arg3 : i32, i32, i32
  }
  func.func @transform_1(%arg0: i32, %arg1: i32, %arg2: i32, %arg3: i32) -> (i32, i32, i32) {
    %c0_i32 = arith.constant 0 : i32
    return %arg0, %arg3, %arg2 : i32, i32, i32
  }
  func.func @transform_2(%arg0: i32, %arg1: i32, %arg2: i32, %arg3: i32) -> (i32, i32, i32) {
    %c0_i32 = arith.constant 0 : i32
    %c0_i32_0 = arith.constant 0 : i32
    return %arg0, %c0_i32, %arg2 : i32, i32, i32
  }
  func.func @transform_3(%arg0: i32, %arg1: i32, %arg2: i32, %arg3: i32) -> (i32, i32, i32) {
    %c0_i32 = arith.constant 0 : i32
    return %arg0, %arg1, %arg2 : i32, i32, i32
  }
}

</mosaic_0001>

<bundles_post_ra>
// kernel: batched_matmul_bias_act.1
= control target key start
LH: loop header
LB: loop body
LE: loop exit
PB: predicated region body
PF: predicated region fallthrough
CT: control target
= control target key end

     0   :  { %s1589_s12 = smov 0   ;;  %s1591_s13 = smov 0   ;;  %s1726_s0 = inlined_call_operand.vmem [shape: bf16[1,4096,128], index: 0, kind: input, shape index: {}]   ;;  %s1727_s1 = inlined_call_operand.vmem [shape: bf16[1,128,128], index: 1, kind: input, shape index: {}]   ;;  %s1728_s2 = inlined_call_operand.vmem [shape: f32[1,1,128], index: 2, kind: input, shape index: {}]   ;;  %s1729_s3 = inlined_call_operand.vmem [shape: bf16[1,4096,128], index: 3, kind: output, shape index: {}]  }
   0x1   :  { %s1593_s14 = smov 0  }
   0x2 LB: > { %s35_s15 = sadd.s32 1, %s1563_s13  ;;  %p1218_p0 = scmp.ge.s32.totalorder %s1567_s14, 1  ;;  %s1567_s14 = sphi %s1593_s14, %s13_s14   ;;  %s1563_s13 = sphi %s1591_s13, %s1731_s13   ;;  %s1559_s12 = sphi %s1589_s12, %s1730_s12  }
   0x3   : > { %p37_p1 = scmp.ge.s32.totalorder %s35_s15, 16  ;;  %p214_p2 = scmp.lt.s32.totalorder %s1567_s14, 17 }
   0x5   : > { %s1733_s15 = smov (%p37_p1, %s35_s15), 0  ;;  %p215_p3 = pnand %p1218_p0, %p214_p2 }
   0x6   : > { %v1521_v0 = vld [vmem:[%s1727_s1] sm:$0xff] (!%p215_p3)   ;;  %s1219_s18 = sshll.u32 (!%p215_p3), %s1559_s12, 5  ;;  %v1522_v1 = vld [vmem:[%s1727_s1 + $0x8] sm:$0xff] (!%p215_p3)   ;;  %v1523_v2 = vld [vmem:[%s1727_s1 + $0x10] sm:$0xff] (!%p215_p3)  }
   0x7   : > { %218 = sbr.rel (%p215_p3) target bundleno = 285 (0x11d), region = 32  ;;  %p273_p4 = scmp.lt.s32.totalorder (!%p215_p3), %s1219_s18, 511  ;;  %1433 = vmatprep.subr.bf16.mxu0 (!%p215_p3), %v1521_v0  ;;  %1481 = vmatprep.subr.bf16.mxu1 (!%p215_p3), %v1521_v0  ;;  %v1524_v3 = vld [vmem:[%s1727_s1 + $0x18] sm:$0xff] (!%p215_p3)   ;;  %v1525_v6 = vld [vmem:[%s1727_s1 + $0x20] sm:$0xff] (!%p215_p3)   ;;  %v1526_v7 = vld [vmem:[%s1727_s1 + $0x28] sm:$0xff] (!%p215_p3)  }
   0x8   : > { %1434 = vmatpush3.bf16.msra.mxu0 (!%p215_p3), %v1521_v0  ;;  %1489 = vmatpush3.bf16.msra.mxu1 (!%p215_p3), %v1521_v0  ;;  %v1527_v8 = vld [vmem:[%s1727_s1 + $0x30] sm:$0xff] (!%p215_p3)   ;;  %v1528_v9 = vld [vmem:[%s1727_s1 + $0x38] sm:$0xff] (!%p215_p3)   ;;  %v1660_v24 = vld [vmem:[%s1728_s2] ss:$0 sm:$0xff] (!%p215_p3) }
   0x9   : > { %1435 = vmatprep.subr.bf16.mxu0 (!%p215_p3), %v1522_v1  ;;  %1482 = vmatprep.subr.bf16.mxu1 (!%p215_p3), %v1522_v1 }
   0xc   : > { %1436 = vmatpush3.bf16.msra.mxu0 (!%p215_p3), %v1522_v1  ;;  %1490 = vmatpush3.bf16.msra.mxu1 (!%p215_p3), %v1522_v1 }
   0xd   : > { %1437 = vmatprep.subr.bf16.mxu0 (!%p215_p3), %v1523_v2  ;;  %1483 = vmatprep.subr.bf16.mxu1 (!%p215_p3), %v1523_v2 }
   0xe   : > { %s1735_s18 = smov (!%p273_p4, %s1219_s18), 511 }
   0xf   : > { %s1220_s23 = sshll.u32 %s1735_s18, 2 }
  0x10   : > { %s1624_s26 = scalar_lea.vmem %s1726_s0, %s1220_s23  ;;  %1438 = vmatpush3.bf16.msra.mxu0 %v1523_v2  ;;  %1491 = vmatpush3.bf16.msra.mxu1 %v1523_v2  ;;  %s1675_s17 = scalar_lea.vmem %s1729_s3, %s1220_s23 }
  0x11   : > { %v1529_v4 = vld [vmem:[%s1624_s26] sm:$0xff]   ;;  %1439 = vmatprep.subr.bf16.mxu0 %v1524_v3  ;;  %1484 = vmatprep.subr.bf16.mxu1 %v1524_v3  ;;  %v1531_v10 = vld [vmem:[%s1624_s26 + $0x8] sm:$0xff]   ;;  %v1533_v12 = vld [vmem:[%s1624_s26 + $0x10] sm:$0xff]  }
  0x12   : > { %v1530_v5 = vld [vmem:[%s1624_s26 + $0x40] sm:$0xff]   ;;  %1449 = vmatprep.mubr.bf16.mxu0 %v1529_v4  ;;  %v1532_v11 = vld [vmem:[%s1624_s26 + $0x48] sm:$0xff]   ;;  %v1534_v13 = vld [vmem:[%s1624_s26 + $0x50] sm:$0xff]  }
  0x13   : > { %1465 = vmatprep.mubr.bf16.mxu1 %v1530_v5  ;;  %v1535_v14 = vld [vmem:[%s1624_s26 + $0x18] sm:$0xff]   ;;  %v1537_v16 = vld [vmem:[%s1624_s26 + $0x20] sm:$0xff]   ;;  %v1539_v18 = vld [vmem:[%s1624_s26 + $0x28] sm:$0xff]  }
  0x14   : > { %1440 = vmatpush3.bf16.msra.mxu0 %v1524_v3  ;;  %1492 = vmatpush3.bf16.msra.mxu1 %v1524_v3  ;;  %v1536_v15 = vld [vmem:[%s1624_s26 + $0x58] sm:$0xff]   ;;  %v1538_v17 = vld [vmem:[%s1624_s26 + $0x60] sm:$0xff]   ;;  %v1540_v19 = vld [vmem:[%s1624_s26 + $0x68] sm:$0xff]  }
  0x15   : > { %1441 = vmatprep.subr.bf16.mxu0 %v1525_v6  ;;  %1485 = vmatprep.subr.bf16.mxu1 %v1525_v6  ;;  %v1541_v20 = vld [vmem:[%s1624_s26 + $0x30] sm:$0xff]   ;;  %v1543_v22 = vld [vmem:[%s1624_s26 + $0x38] sm:$0xff]  }
  0x16   : > { %v1542_v21 = vld [vmem:[%s1624_s26 + $0x70] sm:$0xff]   ;;  %v1544_v23 = vld [vmem:[%s1624_s26 + $0x78] sm:$0xff]  }
  0x18   : > { %1442 = vmatpush3.bf16.msra.mxu0 %v1525_v6  ;;  %1493 = vmatpush3.bf16.msra.mxu1 %v1525_v6 }
  0x19   : > { %1443 = vmatprep.subr.bf16.mxu0 %v1526_v7  ;;  %1486 = vmatprep.subr.bf16.mxu1 %v1526_v7 }
  0x1c   : > { %1444 = vmatpush3.bf16.msra.mxu0 %v1526_v7  ;;  %1494 = vmatpush3.bf16.msra.mxu1 %v1526_v7 }
  0x1d   : > { %1445 = vmatprep.subr.bf16.mxu0 %v1527_v8  ;;  %1487 = vmatprep.subr.bf16.mxu1 %v1527_v8 }
  0x20   : > { %1446 = vmatpush3.bf16.msra.mxu0 %v1527_v8  ;;  %1495 = vmatpush3.bf16.msra.mxu1 %v1527_v8 }
  0x21   : > { %1447 = vmatprep.subr.bf16.mxu0 %v1528_v9  ;;  %1488 = vmatprep.subr.bf16.mxu1 %v1528_v9 }
  0x24   : > { %1448 = vmatpush3.bf16.msra.mxu0 %v1528_v9  ;;  %1496 = vmatpush3.bf16.msra.mxu1 %v1528_v9 }
  0x27   : > { %1450 = vmatmul.mubr.bf16.vlgmr.msra.gmra.mrb[0].mxu0 %v1531_v10  ;;  %1466 = vmatmul.mubr.bf16.vlgmr.msra.gmra.mrb[0].mxu1 %v1532_v11 }
  0x28   : > { %1453 = vmatprep.mubr.bf16.mxu0 %v1533_v12  ;;  %1469 = vmatprep.mubr.bf16.mxu1 %v1534_v13 }
  0x2f   : > { %1454 = vmatmul.mubr.bf16.gmra.mrb[4].mxu0 %v1535_v14  ;;  %1470 = vmatmul.mubr.bf16.gmra.mrb[4].mxu1 %v1536_v15 }
  0x30   : > { %1457 = vmatprep.mubr.bf16.mxu0 %v1537_v16  ;;  %1473 = vmatprep.mubr.bf16.mxu1 %v1538_v17 }
  0x37   : > { %1458 = vmatmul.mubr.bf16.gmra.mrb[8].mxu0 %v1539_v18  ;;  %1474 = vmatmul.mubr.bf16.gmra.mrb[8].mxu1 %v1540_v19 }
  0x38   : > { %1461 = vmatprep.mubr.bf16.mxu0 %v1541_v20  ;;  %1477 = vmatprep.mubr.bf16.mxu1 %v1542_v21 }
  0x3f   : > { %1462 = vmatmul.mubr.bf16.gmra.mrb[12].mxu0 %v1543_v22  ;;  %1478 = vmatmul.mubr.bf16.gmra.mrb[12].mxu1 %v1544_v23 }
  0xfa   : > { %v1451_v25 = vpop.f32.mrb[0].mxu0  ;;  %v1467_v26 = vpop.f32.mrb[0].mxu1 }
  0xfb   : > { %v845_v27 = vadd.f32 %v1451_v25, %v1660_v24  ;;  %v861_v28 = vadd.f32 %v1467_v26, %v1660_v24  ;;  %v610_v29 = vpop.f32.mrb[1].mxu0  ;;  %v674_v30 = vpop.f32.mrb[1].mxu1 }
  0xfc   : > { %v843_v31 = vadd.f32 %v1660_v24, %v610_v29  ;;  %v859_v32 = vadd.f32 %v1660_v24, %v674_v30  ;;  %v1452_v33 = vpop.f32.mrb[2].mxu0  ;;  %v1468_v34 = vpop.f32.mrb[2].mxu1 }
  0xfd   : > { %v846_v35 = vadd.f32 %v1452_v33, %v1660_v24  ;;  %v862_v36 = vadd.f32 %v1468_v34, %v1660_v24  ;;  %v613_v37 = vpop.f32.mrb[3].mxu0  ;;  %v677_v38 = vpop.f32.mrb[3].mxu1  ;;  %v877_v41 = vmax.f32 %v845_v27, 0.0  ;;  %v893_v42 = vmax.f32 %v861_v28, 0.0 }
  0xfe   : > { %v844_v39 = vadd.f32 %v1660_v24, %v613_v37  ;;  %v860_v40 = vadd.f32 %v1660_v24, %v677_v38  ;;  %v875_v45 = vmax.f32 %v843_v31, 0.0  ;;  %v891_v46 = vmax.f32 %v859_v32, 0.0 }
  0xff   : > { %v878_v43 = vmax.f32 %v846_v35, 0.0  ;;  %v894_v44 = vmax.f32 %v862_v36, 0.0 }
 0x100   : > { %v876_v47 = vmax.f32 %v844_v39, 0.0  ;;  %v892_v48 = vmax.f32 %v860_v40, 0.0 }
 0x101   : > { %v1322_v49 = vpack.c.bf16 %v878_v43, %v877_v41  ;;  %v1362_v50 = vpack.c.bf16 %v894_v44, %v893_v42 }
 0x102   : > { %v1317_v51 = vpack.c.bf16 %v876_v47, %v875_v45  ;;  %v1357_v52 = vpack.c.bf16 %v892_v48, %v891_v46  ;;  %v1455_v53 = vpop.f32.mrb[4].mxu0  ;;  %v1471_v54 = vpop.f32.mrb[4].mxu1 }
 0x103   : > { %1394 = vst [vmem:[%s1675_s17 + $0x8] sm:$0xff] %v1322_v49   ;;  %1402 = vst [vmem:[%s1675_s17 + $0x48] sm:$0xff] %v1362_v50   ;;  %v849_v55 = vadd.f32 %v1455_v53, %v1660_v24  ;;  %v865_v56 = vadd.f32 %v1471_v54, %v1660_v24  ;;  %v626_v57 = vpop.f32.mrb[5].mxu0  ;;  %v690_v58 = vpop.f32.mrb[5].mxu1 }
 0x104   : > { %1318 = vst [vmem:[%s1675_s17] sm:$0xff] %v1317_v51   ;;  %1401 = vst [vmem:[%s1675_s17 + $0x40] sm:$0xff] %v1357_v52   ;;  %v847_v59 = vadd.f32 %v1660_v24, %v626_v57  ;;  %v863_v60 = vadd.f32 %v1660_v24, %v690_v58  ;;  %v1456_v61 = vpop.f32.mrb[6].mxu0  ;;  %v1472_v62 = vpop.f32.mrb[6].mxu1 }
 0x105   : > { %v850_v63 = vadd.f32 %v1456_v61, %v1660_v24  ;;  %v866_v0 = vadd.f32 %v1472_v62, %v1660_v24  ;;  %v629_v1 = vpop.f32.mrb[7].mxu0  ;;  %v693_v2 = vpop.f32.mrb[7].mxu1  ;;  %v881_v5 = vmax.f32 %v849_v55, 0.0  ;;  %v897_v6 = vmax.f32 %v865_v56, 0.0 }
 0x106   : > { %v848_v3 = vadd.f32 %v1660_v24, %v629_v1  ;;  %v864_v4 = vadd.f32 %v1660_v24, %v693_v2  ;;  %v879_v9 = vmax.f32 %v847_v59, 0.0  ;;  %v895_v10 = vmax.f32 %v863_v60, 0.0 }
 0x107   : > { %v882_v7 = vmax.f32 %v850_v63, 0.0  ;;  %v898_v8 = vmax.f32 %v866_v0, 0.0 }
 0x108   : > { %v880_v11 = vmax.f32 %v848_v3, 0.0  ;;  %v896_v12 = vmax.f32 %v864_v4, 0.0 }
 0x109   : > { %v1332_v13 = vpack.c.bf16 %v882_v7, %v881_v5  ;;  %v1372_v14 = vpack.c.bf16 %v898_v8, %v897_v6 }
 0x10a   : > { %v1327_v15 = vpack.c.bf16 %v880_v11, %v879_v9  ;;  %v1367_v16 = vpack.c.bf16 %v896_v12, %v895_v10  ;;  %v1459_v17 = vpop.f32.mrb[8].mxu0  ;;  %v1475_v18 = vpop.f32.mrb[8].mxu1 }
 0x10b   : > { %1396 = vst [vmem:[%s1675_s17 + $0x18] sm:$0xff] %v1332_v13   ;;  %1404 = vst [vmem:[%s1675_s17 + $0x58] sm:$0xff] %v1372_v14   ;;  %v853_v19 = vadd.f32 %v1459_v17, %v1660_v24  ;;  %v869_v20 = vadd.f32 %v1475_v18, %v1660_v24  ;;  %v642_v21 = vpop.f32.mrb[9].mxu0  ;;  %v706_v22 = vpop.f32.mrb[9].mxu1 }
 0x10c   : > { %1395 = vst [vmem:[%s1675_s17 + $0x10] sm:$0xff] %v1327_v15   ;;  %1403 = vst [vmem:[%s1675_s17 + $0x50] sm:$0xff] %v1367_v16   ;;  %v851_v23 = vadd.f32 %v1660_v24, %v642_v21  ;;  %v867_v25 = vadd.f32 %v1660_v24, %v706_v22  ;;  %v1460_v26 = vpop.f32.mrb[10].mxu0  ;;  %v1476_v27 = vpop.f32.mrb[10].mxu1 }
 0x10d   : > { %v854_v28 = vadd.f32 %v1460_v26, %v1660_v24  ;;  %v870_v29 = vadd.f32 %v1476_v27, %v1660_v24  ;;  %v645_v30 = vpop.f32.mrb[11].mxu0  ;;  %v709_v31 = vpop.f32.mrb[11].mxu1  ;;  %v885_v34 = vmax.f32 %v853_v19, 0.0  ;;  %v901_v35 = vmax.f32 %v869_v20, 0.0 }
 0x10e   : > { %v852_v32 = vadd.f32 %v1660_v24, %v645_v30  ;;  %v868_v33 = vadd.f32 %v1660_v24, %v709_v31  ;;  %v883_v38 = vmax.f32 %v851_v23, 0.0  ;;  %v899_v39 = vmax.f32 %v867_v25, 0.0 }
 0x10f   : > { %v886_v36 = vmax.f32 %v854_v28, 0.0  ;;  %v902_v37 = vmax.f32 %v870_v29, 0.0 }
 0x110   : > { %v884_v40 = vmax.f32 %v852_v32, 0.0  ;;  %v900_v41 = vmax.f32 %v868_v33, 0.0 }
 0x111   : > { %v1342_v42 = vpack.c.bf16 %v886_v36, %v885_v34  ;;  %v1382_v43 = vpack.c.bf16 %v902_v37, %v901_v35 }
 0x112   : > { %v1337_v44 = vpack.c.bf16 %v884_v40, %v883_v38  ;;  %v1377_v45 = vpack.c.bf16 %v900_v41, %v899_v39  ;;  %v1463_v46 = vpop.f32.mrb[12].mxu0  ;;  %v1479_v47 = vpop.f32.mrb[12].mxu1 }
 0x113   : > { %1398 = vst [vmem:[%s1675_s17 + $0x28] sm:$0xff] %v1342_v42   ;;  %1406 = vst [vmem:[%s1675_s17 + $0x68] sm:$0xff] %v1382_v43   ;;  %v857_v48 = vadd.f32 %v1463_v46, %v1660_v24  ;;  %v873_v49 = vadd.f32 %v1479_v47, %v1660_v24  ;;  %v658_v50 = vpop.f32.mrb[13].mxu0  ;;  %v722_v51 = vpop.f32.mrb[13].mxu1 }
 0x114   : > { %1397 = vst [vmem:[%s1675_s17 + $0x20] sm:$0xff] %v1337_v44   ;;  %1405 = vst [vmem:[%s1675_s17 + $0x60] sm:$0xff] %v1377_v45   ;;  %v855_v52 = vadd.f32 %v1660_v24, %v658_v50  ;;  %v871_v53 = vadd.f32 %v1660_v24, %v722_v51  ;;  %v1464_v54 = vpop.f32.mrb[14].mxu0  ;;  %v1480_v55 = vpop.f32.mrb[14].mxu1 }
 0x115   : > { %v858_v56 = vadd.f32 %v1464_v54, %v1660_v24  ;;  %v874_v57 = vadd.f32 %v1480_v55, %v1660_v24  ;;  %v661_v58 = vpop.f32.mrb[15].mxu0  ;;  %v725_v59 = vpop.f32.mrb[15].mxu1  ;;  %v889_v62 = vmax.f32 %v857_v48, 0.0  ;;  %v905_v63 = vmax.f32 %v873_v49, 0.0 }
 0x116   : > { %v856_v60 = vadd.f32 %v1660_v24, %v661_v58  ;;  %v872_v61 = vadd.f32 %v1660_v24, %v725_v59  ;;  %v887_v2 = vmax.f32 %v855_v52, 0.0  ;;  %v903_v3 = vmax.f32 %v871_v53, 0.0 }
 0x117   : > { %v890_v0 = vmax.f32 %v858_v56, 0.0  ;;  %v906_v1 = vmax.f32 %v874_v57, 0.0 }
 0x118   : > { %v888_v4 = vmax.f32 %v856_v60, 0.0  ;;  %v904_v5 = vmax.f32 %v872_v61, 0.0 }
 0x119   : > { %v1352_v6 = vpack.c.bf16 %v890_v0, %v889_v62  ;;  %v1392_v7 = vpack.c.bf16 %v906_v1, %v905_v63 }
 0x11a   : > { %v1347_v8 = vpack.c.bf16 %v888_v4, %v887_v2  ;;  %v1387_v9 = vpack.c.bf16 %v904_v5, %v903_v3 }
 0x11b   : > { %1400 = vst [vmem:[%s1675_s17 + $0x38] sm:$0xff] %v1352_v6   ;;  %1408 = vst [vmem:[%s1675_s17 + $0x78] sm:$0xff] %v1392_v7  }
 0x11c   : > { %1399 = vst [vmem:[%s1675_s17 + $0x30] sm:$0xff] %v1347_v8   ;;  %1407 = vst [vmem:[%s1675_s17 + $0x70] sm:$0xff] %v1387_v9  }
 0x11d PF: > { %s13_s14 = sadd.s32 1, %s1567_s14   ;;  %s1730_s12 = smov %s1563_s13 }
 0x11e   : > { %p10_p5 = scmp.ge.s32.totalorder %s13_s14, 18   ;;  %s1731_s13 = smov %s1733_s15 }
 0x120   :  { %12 = sbr.rel (!%p10_p5) target bundleno = 2 (0x2), region = 76 }

</bundles_post_ra>
